<compile_context>
chip_gen: v7x
topology: tpu7x:2x2x1
jax: 0.10.0
libtpu: 0.0.40
codegen_flags: <defaults>
</compile_context>

<pallas_src>
import math
import numpy as np
import jax
import jax.numpy as jnp
from jax.experimental import pallas as pl
from jax.experimental.pallas import tpu as pltpu


def _round_up(v, m):
    return ((v + m - 1) // m) * m


# ----------------------------------------------------------------------------
# Host-side constants: window-folded, [Re | Im]-packed one-sided DFT matrices.
# ----------------------------------------------------------------------------
def _packed_dft(n_fft, bins, f_pad):
    """Returns (D_top, D_bot): the two hop-sized row-halves of the window-folded
    DFT matrix whose columns are [Re(bins) | Im(bins)], zero-padded so each half
    has f_pad columns (f_pad is a multiple of 128)."""
    n = np.arange(n_fft, dtype=np.float64)
    k = np.asarray(bins, dtype=np.float64)
    ang = 2.0 * np.pi * np.outer(n, k) / n_fft
    win = 0.5 * (1.0 - np.cos(2.0 * np.pi * n / n_fft))   # periodic hann(n_fft)
    re = np.cos(ang) * win[:, None]
    im = -np.sin(ang) * win[:, None]
    d = np.zeros((n_fft, 2 * f_pad), dtype=np.float32)
    nb = len(bins)
    d[:, :nb] = re
    d[:, f_pad:f_pad + nb] = im
    hop = n_fft // 2
    return d[:hop], d[hop:]


# ----------------------------------------------------------------------------
# Gather-free framing: reflect-pad, view as hop-chunks, frame i = [chunk i |
# chunk i+1].  Fake frames beyond Fr are all-zero for both signals.
# ----------------------------------------------------------------------------
def _chunk_views(sig, n_fft, hop, fr_pad):
    B, T = sig.shape
    pad = n_fft // 2   # == hop (win_length == n_fft, hop == n_fft // 2)
    padded = jnp.pad(sig, ((0, 0), (pad, pad)), mode="reflect")
    fr = 1 + T // hop
    chunks = padded[:, :(fr + 1) * hop].reshape(B, fr + 1, hop)
    lo = chunks[:, :fr]          # first half of frame i
    hi = chunks[:, 1:fr + 1]     # second half of frame i
    if fr_pad > fr:
        z = jnp.zeros((B, fr_pad - fr, hop), dtype=sig.dtype)
        lo = jnp.concatenate([lo, z], axis=1)
        hi = jnp.concatenate([hi, z], axis=1)
    return lo.astype(jnp.bfloat16), hi.astype(jnp.bfloat16)


# ----------------------------------------------------------------------------
# Pallas kernel: one (batch, frame-tile) block per grid step.
# ----------------------------------------------------------------------------
def _stft_loss_kernel(lox_ref, hix_ref, loy_ref, hiy_ref,
                      dxt_ref, dxb_ref, dyt_ref, dyb_ref,
                      d2_ref, y2_ref, l1_ref):
    # Windowed-frame one-sided DFT via two half-K MXU matmuls per signal.
    zx = (jnp.dot(lox_ref[0], dxt_ref[...], preferred_element_type=jnp.float32)
          + jnp.dot(hix_ref[0], dxb_ref[...], preferred_element_type=jnp.float32))
    zy = (jnp.dot(loy_ref[0], dyt_ref[...], preferred_element_type=jnp.float32)
          + jnp.dot(hiy_ref[0], dyb_ref[...], preferred_element_type=jnp.float32))

    fp = zx.shape[-1] // 2                      # lane-aligned Re/Im split
    x_pow = jnp.maximum(zx[:, :fp] * zx[:, :fp] + zx[:, fp:] * zx[:, fp:], 1e-7)
    y_pow = jnp.maximum(zy[:, :fp] * zy[:, :fp] + zy[:, fp:] * zy[:, fp:], 1e-7)

    diff = y_pow - x_pow
    labs = jnp.abs(jnp.log(y_pow) - jnp.log(x_pow))

    ft = x_pow.shape[0]

    def _part8(v):
        # Partial frame-axis reduction down to 8 sublane rows (cheap, no XLU
        # cross-lane work; keeps the output block (8, f_pad)-aligned).
        return jnp.sum(v.reshape(ft // 8, 8, fp), axis=0)

    d2_ref[0] = _part8(diff * diff)
    y2_ref[0] = _part8(y_pow * y_pow)
    l1_ref[0] = _part8(labs)


# ----------------------------------------------------------------------------
# Wrapper == STFTLoss.forward(x, y, y_pass)
# ----------------------------------------------------------------------------
def stft_loss(x, y, y_pass, *, fft_size=1024, factor_sc=0.1, factor_mag=0.1,
              frame_tile=256):
    n_fft_x = fft_size // 2
    n_fft_y = fft_size
    hop_x, hop_y = n_fft_x // 2, n_fft_y // 2

    B, Tx = x.shape
    _, Ty = y.shape
    fr_x = 1 + Tx // hop_x
    fr_y = 1 + Ty // hop_y
    assert fr_x == fr_y, "x/y must produce the same number of STFT frames"
    Fr = fr_x

    F = n_fft_x // 2 + 1
    n_freq_y = n_fft_y // 2 + 1
    assert math.ceil(n_freq_y / 2) == F
    f_pad = _round_up(F, 128)

    # Frame tile: multiple of 16 (bf16 sublane packing), capped for VMEM
    # (<=256 also fits v7x's 64 MiB VMEM comfortably).
    ft = min(frame_tile, _round_up(Fr, 16))
    fr_pad = _round_up(Fr, ft)
    n_t = fr_pad // ft

    lo_x, hi_x = _chunk_views(x, n_fft_x, hop_x, fr_pad)
    lo_y, hi_y = _chunk_views(y, n_fft_y, hop_y, fr_pad)

    # Band slicing of y_mag == selecting the DFT bins (clamp commutes).
    x_bins = np.arange(F)
    y_bins = x_bins if y_pass == "high" else x_bins + (F - 1)
    dxt_np, dxb_np = _packed_dft(n_fft_x, x_bins, f_pad)
    dyt_np, dyb_np = _packed_dft(n_fft_y, y_bins, f_pad)
    dxt, dxb, dyt, dyb = (jnp.asarray(a, dtype=jnp.bfloat16)
                          for a in (dxt_np, dxb_np, dyt_np, dyb_np))

    def frame_spec(hop):
        return pl.BlockSpec((1, ft, hop), lambda b, t: (b, t, 0))

    def const_spec(k):
        return pl.BlockSpec((k, 2 * f_pad), lambda b, t: (0, 0))

    out_spec = pl.BlockSpec((1, 8, f_pad), lambda b, t: (b, t, 0))
    out_shape = tuple(jax.ShapeDtypeStruct((B, 8 * n_t, f_pad), jnp.float32)
                      for _ in range(3))

    d2, y2, l1 = pl.pallas_call(
        _stft_loss_kernel,
        out_shape=out_shape,
        grid_spec=pltpu.PrefetchScalarGridSpec(
            num_scalar_prefetch=0,
            grid=(B, n_t),
            in_specs=[frame_spec(hop_x), frame_spec(hop_x),
                      frame_spec(hop_y), frame_spec(hop_y),
                      const_spec(hop_x), const_spec(hop_x),
                      const_spec(hop_y), const_spec(hop_y)],
            out_specs=[out_spec, out_spec, out_spec],
        ),
        compiler_params=pltpu.CompilerParams(
            dimension_semantics=("parallel", "parallel"),
            vmem_limit_bytes=40 * 1024 * 1024),
    )(lo_x, hi_x, lo_y, hi_y, dxt, dxb, dyt, dyb)

    # Drop padded frequency columns; padded frames contribute exactly 0 to
    # d2/l1 and ~1e-14 per element to y2 (negligible).
    d2s = jnp.sum(d2[..., :F])
    y2s = jnp.sum(y2[..., :F])
    l1s = jnp.sum(l1[..., :F])

    sc_loss = jnp.sqrt(d2s) / jnp.sqrt(y2s)          # SpectralConvergengeLoss
    mag_loss = l1s / (B * Fr * F)                    # LogSTFTMagnitudeLoss (mean)
    return factor_sc * sc_loss + factor_mag * mag_loss


# ----------------------------------------------------------------------------
# Pure-JAX reference mirroring the PyTorch forward (for verification only).
# ----------------------------------------------------------------------------
def _hann(n_fft):
    n = jnp.arange(n_fft, dtype=jnp.float32)
    return 0.5 * (1.0 - jnp.cos(2.0 * jnp.pi * n / n_fft))


def _frame_ref(sig, n_fft, hop):
    B, T = sig.shape
    pad = n_fft // 2
    padded = jnp.pad(sig, ((0, 0), (pad, pad)), mode="reflect")
    n_frames = 1 + T // hop
    idx = jnp.arange(n_frames)[:, None] * hop + jnp.arange(n_fft)[None, :]
    return padded[:, idx]


def stft_loss_ref(x, y, y_pass, *, fft_size=1024, factor_sc=0.1, factor_mag=0.1):
    def spec(sig, n_fft):
        frames = _frame_ref(sig, n_fft, n_fft // 2) * _hann(n_fft)
        return jnp.maximum(jnp.abs(jnp.fft.rfft(frames, axis=-1)) ** 2, 1e-7)

    x_mag = spec(x, fft_size // 2)
    y_mag = spec(y, fft_size)
    F = x_mag.shape[-1]
    assert math.ceil(y_mag.shape[-1] / 2) == F
    y_mag = y_mag[..., :F] if y_pass == "high" else y_mag[..., F - 1:]
    sc = jnp.linalg.norm(y_mag - x_mag) / jnp.linalg.norm(y_mag)
    mag = jnp.mean(jnp.abs(jnp.log(y_mag) - jnp.log(x_mag)))
    return factor_sc * sc + factor_mag * mag


if __name__ == "__main__":
    key = jax.random.PRNGKey(0)
    kx, ky = jax.random.split(key)

    # y is the full-rate groundtruth, x the predicted half-rate signal so both
    # spectrograms share the same frame count (as the module requires).
    fft_size = 64
    B = 2
    T_y = 256
    T_x = T_y // 2
    x = jax.random.normal(kx, (B, T_x), dtype=jnp.float32)
    y = jax.random.normal(ky, (B, T_y), dtype=jnp.float32)

    for y_pass in ("high", "low"):
        out = jax.block_until_ready(stft_loss(x, y, y_pass, fft_size=fft_size))
        ref = stft_loss_ref(x, y, y_pass, fft_size=fft_size)
        np.testing.assert_allclose(np.asarray(out), np.asarray(ref),
                                   rtol=2e-2, atol=2e-2)

    print("KERNEL_OK")
</pallas_src>

<mosaic_0001>
module attributes {stable_mosaic.version = 11 : i64} {
  func.func @_stft_loss_kernel(%arg0: i32, %arg1: i32, %arg2: memref<1x16x16xbf16, #tpu.memory_space<vmem>>, %arg3: memref<1x16x16xbf16, #tpu.memory_space<vmem>>, %arg4: memref<1x16x32xbf16, #tpu.memory_space<vmem>>, %arg5: memref<1x16x32xbf16, #tpu.memory_space<vmem>>, %arg6: memref<16x256xbf16, #tpu.memory_space<vmem>>, %arg7: memref<16x256xbf16, #tpu.memory_space<vmem>>, %arg8: memref<32x256xbf16, #tpu.memory_space<vmem>>, %arg9: memref<32x256xbf16, #tpu.memory_space<vmem>>, %arg10: memref<1x8x128xf32, #tpu.memory_space<vmem>>, %arg11: memref<1x8x128xf32, #tpu.memory_space<vmem>>, %arg12: memref<1x8x128xf32, #tpu.memory_space<vmem>>) attributes {dimension_semantics = [#tpu.dimension_semantics<parallel>, #tpu.dimension_semantics<parallel>], iteration_bounds = array<i64: 2, 1>, scalar_prefetch = 0 : i64, scratch_operands = 0 : i64, tpu.core_type = #tpu.core_type<tc>, window_params = [{transform_indices = @transform_0, window_bounds = array<i64: 1, 16, 16>}, {transform_indices = @transform_1, window_bounds = array<i64: 1, 16, 16>}, {transform_indices = @transform_2, window_bounds = array<i64: 1, 16, 32>}, {transform_indices = @transform_3, window_bounds = array<i64: 1, 16, 32>}, {pipeline_mode = #tpu.pipeline_mode<synchronous>, transform_indices = @transform_4, window_bounds = array<i64: 16, 256>}, {pipeline_mode = #tpu.pipeline_mode<synchronous>, transform_indices = @transform_5, window_bounds = array<i64: 16, 256>}, {pipeline_mode = #tpu.pipeline_mode<synchronous>, transform_indices = @transform_6, window_bounds = array<i64: 32, 256>}, {pipeline_mode = #tpu.pipeline_mode<synchronous>, transform_indices = @transform_7, window_bounds = array<i64: 32, 256>}, {transform_indices = @transform_8, window_bounds = array<i64: 1, 8, 128>}, {transform_indices = @transform_9, window_bounds = array<i64: 1, 8, 128>}, {transform_indices = @transform_10, window_bounds = array<i64: 1, 8, 128>}]} {
    %c0 = arith.constant 0 : index
    %c0_0 = arith.constant 0 : index
    %c0_1 = arith.constant 0 : index
    %0 = vector.load %arg2[%c0, %c0_0, %c0_1] : memref<1x16x16xbf16, #tpu.memory_space<vmem>>, vector<1x16x16xbf16>
    %1 = vector.shape_cast %0 : vector<1x16x16xbf16> to vector<16x16xbf16>
    %c0_2 = arith.constant 0 : index
    %c0_3 = arith.constant 0 : index
    %2 = vector.load %arg6[%c0_2, %c0_3] : memref<16x256xbf16, #tpu.memory_space<vmem>>, vector<16x256xbf16>
    %cst = arith.constant dense<0.000000e+00> : vector<16x256xf32>
    %3 = tpu.matmul %1, %2, %cst {dimension_numbers = #tpu.dot_dimension_numbers<[1], [0], [0], [1], [0, 0, 1, 1], [], []>} : vector<16x16xbf16>, vector<16x256xbf16>, vector<16x256xf32> -> vector<16x256xf32>
    %c0_4 = arith.constant 0 : index
    %c0_5 = arith.constant 0 : index
    %c0_6 = arith.constant 0 : index
    %4 = vector.load %arg3[%c0_4, %c0_5, %c0_6] : memref<1x16x16xbf16, #tpu.memory_space<vmem>>, vector<1x16x16xbf16>
    %5 = vector.shape_cast %4 : vector<1x16x16xbf16> to vector<16x16xbf16>
    %c0_7 = arith.constant 0 : index
    %c0_8 = arith.constant 0 : index
    %6 = vector.load %arg7[%c0_7, %c0_8] : memref<16x256xbf16, #tpu.memory_space<vmem>>, vector<16x256xbf16>
    %cst_9 = arith.constant dense<0.000000e+00> : vector<16x256xf32>
    %7 = tpu.matmul %5, %6, %cst_9 {dimension_numbers = #tpu.dot_dimension_numbers<[1], [0], [0], [1], [0, 0, 1, 1], [], []>} : vector<16x16xbf16>, vector<16x256xbf16>, vector<16x256xf32> -> vector<16x256xf32>
    %8 = arith.addf %3, %7 : vector<16x256xf32>
    %c0_10 = arith.constant 0 : index
    %c0_11 = arith.constant 0 : index
    %c0_12 = arith.constant 0 : index
    %9 = vector.load %arg4[%c0_10, %c0_11, %c0_12] : memref<1x16x32xbf16, #tpu.memory_space<vmem>>, vector<1x16x32xbf16>
    %10 = vector.shape_cast %9 : vector<1x16x32xbf16> to vector<16x32xbf16>
    %c0_13 = arith.constant 0 : index
    %c0_14 = arith.constant 0 : index
    %11 = vector.load %arg8[%c0_13, %c0_14] : memref<32x256xbf16, #tpu.memory_space<vmem>>, vector<32x256xbf16>
    %cst_15 = arith.constant dense<0.000000e+00> : vector<16x256xf32>
    %12 = tpu.matmul %10, %11, %cst_15 {dimension_numbers = #tpu.dot_dimension_numbers<[1], [0], [0], [1], [0, 0, 1, 1], [], []>} : vector<16x32xbf16>, vector<32x256xbf16>, vector<16x256xf32> -> vector<16x256xf32>
    %c0_16 = arith.constant 0 : index
    %c0_17 = arith.constant 0 : index
    %c0_18 = arith.constant 0 : index
    %13 = vector.load %arg5[%c0_16, %c0_17, %c0_18] : memref<1x16x32xbf16, #tpu.memory_space<vmem>>, vector<1x16x32xbf16>
    %14 = vector.shape_cast %13 : vector<1x16x32xbf16> to vector<16x32xbf16>
    %c0_19 = arith.constant 0 : index
    %c0_20 = arith.constant 0 : index
    %15 = vector.load %arg9[%c0_19, %c0_20] : memref<32x256xbf16, #tpu.memory_space<vmem>>, vector<32x256xbf16>
    %cst_21 = arith.constant dense<0.000000e+00> : vector<16x256xf32>
    %16 = tpu.matmul %14, %15, %cst_21 {dimension_numbers = #tpu.dot_dimension_numbers<[1], [0], [0], [1], [0, 0, 1, 1], [], []>} : vector<16x32xbf16>, vector<32x256xbf16>, vector<16x256xf32> -> vector<16x256xf32>
    %17 = arith.addf %12, %16 : vector<16x256xf32>
    %18 = vector.extract_strided_slice %8 {offsets = [0, 0], sizes = [16, 128], strides = [1, 1]} : vector<16x256xf32> to vector<16x128xf32>
    %19 = vector.extract_strided_slice %8 {offsets = [0, 0], sizes = [16, 128], strides = [1, 1]} : vector<16x256xf32> to vector<16x128xf32>
    %20 = arith.mulf %18, %19 : vector<16x128xf32>
    %21 = vector.extract_strided_slice %8 {offsets = [0, 128], sizes = [16, 128], strides = [1, 1]} : vector<16x256xf32> to vector<16x128xf32>
    %22 = vector.extract_strided_slice %8 {offsets = [0, 128], sizes = [16, 128], strides = [1, 1]} : vector<16x256xf32> to vector<16x128xf32>
    %23 = arith.mulf %21, %22 : vector<16x128xf32>
    %24 = arith.addf %20, %23 : vector<16x128xf32>
    %cst_22 = arith.constant 1.000000e-07 : f32
    %25 = vector.broadcast %cst_22 : f32 to vector<16x128xf32>
    %26 = arith.maximumf %24, %25 : vector<16x128xf32>
    %27 = vector.extract_strided_slice %17 {offsets = [0, 0], sizes = [16, 128], strides = [1, 1]} : vector<16x256xf32> to vector<16x128xf32>
    %28 = vector.extract_strided_slice %17 {offsets = [0, 0], sizes = [16, 128], strides = [1, 1]} : vector<16x256xf32> to vector<16x128xf32>
    %29 = arith.mulf %27, %28 : vector<16x128xf32>
    %30 = vector.extract_strided_slice %17 {offsets = [0, 128], sizes = [16, 128], strides = [1, 1]} : vector<16x256xf32> to vector<16x128xf32>
    %31 = vector.extract_strided_slice %17 {offsets = [0, 128], sizes = [16, 128], strides = [1, 1]} : vector<16x256xf32> to vector<16x128xf32>
    %32 = arith.mulf %30, %31 : vector<16x128xf32>
    %33 = arith.addf %29, %32 : vector<16x128xf32>
    %cst_23 = arith.constant 1.000000e-07 : f32
    %34 = vector.broadcast %cst_23 : f32 to vector<16x128xf32>
    %35 = arith.maximumf %33, %34 : vector<16x128xf32>
    %36 = arith.subf %35, %26 : vector<16x128xf32>
    %37 = math.log %35 : vector<16x128xf32>
    %38 = math.log %26 : vector<16x128xf32>
    %39 = arith.subf %37, %38 : vector<16x128xf32>
    %40 = math.absf %39 : vector<16x128xf32>
    %41 = arith.mulf %36, %36 : vector<16x128xf32>
    %42 = vector.shape_cast %41 : vector<16x128xf32> to vector<2x8x128xf32>
    %cst_24 = arith.constant dense<0.000000e+00> : vector<8x128xf32>
    %43 = vector.multi_reduction <add>, %42, %cst_24 [0] : vector<2x8x128xf32> to vector<8x128xf32>
    %c0_25 = arith.constant 0 : index
    %c0_26 = arith.constant 0 : index
    %c0_27 = arith.constant 0 : index
    %44 = vector.load %arg10[%c0_25, %c0_26, %c0_27] : memref<1x8x128xf32, #tpu.memory_space<vmem>>, vector<1x8x128xf32>
    %45 = vector.shape_cast %44 : vector<1x8x128xf32> to vector<8x128xf32>
    %46 = vector.shape_cast %43 : vector<8x128xf32> to vector<1x8x128xf32>
    tpu.vector_store %arg10[%c0_25, %c0_26, %c0_27], %46 {strides = array<i32>} : memref<1x8x128xf32, #tpu.memory_space<vmem>>, vector<1x8x128xf32>,
    %47 = arith.mulf %35, %35 : vector<16x128xf32>
    %48 = vector.shape_cast %47 : vector<16x128xf32> to vector<2x8x128xf32>
    %cst_28 = arith.constant dense<0.000000e+00> : vector<8x128xf32>
    %49 = vector.multi_reduction <add>, %48, %cst_28 [0] : vector<2x8x128xf32> to vector<8x128xf32>
    %c0_29 = arith.constant 0 : index
    %c0_30 = arith.constant 0 : index
    %c0_31 = arith.constant 0 : index
    %50 = vector.load %arg11[%c0_29, %c0_30, %c0_31] : memref<1x8x128xf32, #tpu.memory_space<vmem>>, vector<1x8x128xf32>
    %51 = vector.shape_cast %50 : vector<1x8x128xf32> to vector<8x128xf32>
    %52 = vector.shape_cast %49 : vector<8x128xf32> to vector<1x8x128xf32>
    tpu.vector_store %arg11[%c0_29, %c0_30, %c0_31], %52 {strides = array<i32>} : memref<1x8x128xf32, #tpu.memory_space<vmem>>, vector<1x8x128xf32>,
    %53 = vector.shape_cast %40 : vector<16x128xf32> to vector<2x8x128xf32>
    %cst_32 = arith.constant dense<0.000000e+00> : vector<8x128xf32>
    %54 = vector.multi_reduction <add>, %53, %cst_32 [0] : vector<2x8x128xf32> to vector<8x128xf32>
    %c0_33 = arith.constant 0 : index
    %c0_34 = arith.constant 0 : index
    %c0_35 = arith.constant 0 : index
    %55 = vector.load %arg12[%c0_33, %c0_34, %c0_35] : memref<1x8x128xf32, #tpu.memory_space<vmem>>, vector<1x8x128xf32>
    %56 = vector.shape_cast %55 : vector<1x8x128xf32> to vector<8x128xf32>
    %57 = vector.shape_cast %54 : vector<8x128xf32> to vector<1x8x128xf32>
    tpu.vector_store %arg12[%c0_33, %c0_34, %c0_35], %57 {strides = array<i32>} : memref<1x8x128xf32, #tpu.memory_space<vmem>>, vector<1x8x128xf32>,
    return
  }
  func.func @transform_0(%arg0: i32, %arg1: i32) -> (i32, i32, i32) {
    %c0_i32 = arith.constant 0 : i32
    %c0_i32_0 = arith.constant 0 : i32
    return %arg0, %arg1, %c0_i32 : i32, i32, i32
  }
  func.func @transform_1(%arg0: i32, %arg1: i32) -> (i32, i32, i32) {
    %c0_i32 = arith.constant 0 : i32
    %c0_i32_0 = arith.constant 0 : i32
    return %arg0, %arg1, %c0_i32 : i32, i32, i32
  }
  func.func @transform_2(%arg0: i32, %arg1: i32) -> (i32, i32, i32) {
    %c0_i32 = arith.constant 0 : i32
    %c0_i32_0 = arith.constant 0 : i32
    return %arg0, %arg1, %c0_i32 : i32, i32, i32
  }
  func.func @transform_3(%arg0: i32, %arg1: i32) -> (i32, i32, i32) {
    %c0_i32 = arith.constant 0 : i32
    %c0_i32_0 = arith.constant 0 : i32
    return %arg0, %arg1, %c0_i32 : i32, i32, i32
  }
  func.func @transform_4(%arg0: i32, %arg1: i32) -> (i32, i32) {
    %c0_i32 = arith.constant 0 : i32
    %c0_i32_0 = arith.constant 0 : i32
    %c0_i32_1 = arith.constant 0 : i32
    return %c0_i32, %c0_i32_0 : i32, i32
  }
  func.func @transform_5(%arg0: i32, %arg1: i32) -> (i32, i32) {
    %c0_i32 = arith.constant 0 : i32
    %c0_i32_0 = arith.constant 0 : i32
    %c0_i32_1 = arith.constant 0 : i32
    return %c0_i32, %c0_i32_0 : i32, i32
  }
  func.func @transform_6(%arg0: i32, %arg1: i32) -> (i32, i32) {
    %c0_i32 = arith.constant 0 : i32
    %c0_i32_0 = arith.constant 0 : i32
    %c0_i32_1 = arith.constant 0 : i32
    return %c0_i32, %c0_i32_0 : i32, i32
  }
  func.func @transform_7(%arg0: i32, %arg1: i32) -> (i32, i32) {
    %c0_i32 = arith.constant 0 : i32
    %c0_i32_0 = arith.constant 0 : i32
    %c0_i32_1 = arith.constant 0 : i32
    return %c0_i32, %c0_i32_0 : i32, i32
  }
  func.func @transform_8(%arg0: i32, %arg1: i32) -> (i32, i32, i32) {
    %c0_i32 = arith.constant 0 : i32
    %c0_i32_0 = arith.constant 0 : i32
    return %arg0, %arg1, %c0_i32 : i32, i32, i32
  }
  func.func @transform_9(%arg0: i32, %arg1: i32) -> (i32, i32, i32) {
    %c0_i32 = arith.constant 0 : i32
    %c0_i32_0 = arith.constant 0 : i32
    return %arg0, %arg1, %c0_i32 : i32, i32, i32
  }
  func.func @transform_10(%arg0: i32, %arg1: i32) -> (i32, i32, i32) {
    %c0_i32 = arith.constant 0 : i32
    %c0_i32_0 = arith.constant 0 : i32
    return %arg0, %arg1, %c0_i32 : i32, i32, i32
  }
}

</mosaic_0001>

<bundles_post_ra>
// kernel: tpu_custom_call.1
= control target key start
LH: loop header
LB: loop body
LE: loop exit
PB: predicated region body
PF: predicated region fallthrough
CT: control target
= control target key end

     0   :  { %s2397_s0 = inlined_call_operand.hbm [shape: bf16[2,16,16], index: 0, kind: input, shape index: {}]   ;;  %s2398_s1 = inlined_call_operand.hbm [shape: bf16[2,16,16], index: 1, kind: input, shape index: {}]   ;;  %s2399_s2 = inlined_call_operand.hbm [shape: bf16[2,16,32], index: 2, kind: input, shape index: {}]   ;;  %s2400_s3 = inlined_call_operand.hbm [shape: bf16[2,16,32], index: 3, kind: input, shape index: {}]   ;;  %s2401_s4 = inlined_call_operand.hbm [shape: bf16[16,256], index: 4, kind: input, shape index: {}]   ;;  %s2402_s5 = inlined_call_operand.vmem [shape: bf16[16,256], index: 5, kind: input, shape index: {}]   ;;  %s2403_s6 = inlined_call_operand.hbm [shape: bf16[32,256], index: 6, kind: input, shape index: {}]   ;;  %s2404_s7 = inlined_call_operand.hbm [shape: bf16[32,256], index: 7, kind: input, shape index: {}]   ;;  %s2405_s8 = inlined_call_operand.hbm [shape: f32[2,8,128], index: 8, kind: output, shape index: {0}]   ;;  %s2406_s9 = inlined_call_operand.hbm [shape: f32[2,8,128], index: 9, kind: output, shape index: {1}]   ;;  %s2407_s10 = inlined_call_operand.hbm [shape: f32[2,8,128], index: 10, kind: output, shape index: {2}]  }
   0x1   :  { %2432 = sst [smem:[#allocation32_spill]] %s2398_s1 }
   0x2   :  { %2433 = sst [smem:[#allocation33_spill]] %s2401_s4 }
   0x3   :  { %2434 = sst [smem:[#allocation34_spill]] %s2402_s5 }
   0x4   :  { %2435 = sst [smem:[#allocation35_spill]] %s2403_s6 }
   0x5   :  { %2436 = sst [smem:[#allocation36_spill]] %s2405_s8 }
   0x6   :  { %2437 = sst [smem:[#allocation37_spill]] %s2406_s9 }
   0x7   :  { %2438 = sst [smem:[#allocation38_spill]] %s2407_s10 }
   0x8   :  { %16 = vsyncpa [#allocation3], 0 }
   0x9   :  { %18 = vsyncpa [#allocation3 + $0x1], 0 }
   0xa   :  { %19 = vsyncpa [#allocation6], 0 }
   0xb   :  { %21 = vsyncpa [#allocation6 + $0x1], 0 }
   0xc   :  { %22 = vsyncpa [#allocation9], 0 }
   0xd   :  { %24 = vsyncpa [#allocation9 + $0x1], 0 }
   0xe   :  { %25 = vsyncpa [#allocation12], 0 }
   0xf   :  { %26 = vsyncpa [#allocation4], 0 }
  0x10   :  { %28 = vsyncpa [#allocation4 + $0x1], 0 }
  0x11   :  { %29 = vsyncpa [#allocation16], 0 }
  0x12   :  { %31 = vsyncpa [#allocation16 + $0x1], 0  ;;  %s1879_s13 = smov 0   ;;  %s1881_s14 = smov 0  }
  0x13   :  { %s1883_s15 = smov 0   ;;  %s1885_s16 = smov 0  }
  0x14   :  { %s1887_s17 = smov 0   ;;  %s1889_s18 = smov 0  }
  0x15 LB: > { %2439 = sst [smem:[#allocation25_spill]] %s1787_s13  ;;  %s1910_s19 = sadd.s32 4294967295, %s1807_s18   ;;  %s1807_s18 = sphi %s1889_s18, %s37_s18   ;;  %s1803_s17 = sphi %s1887_s17, %s2488_s17   ;;  %s1799_s16 = sphi %s1885_s16, %s2487_s16   ;;  %s1795_s15 = sphi %s1883_s15, %s2491_s15   ;;  %s1791_s14 = sphi %s1881_s14, %s2490_s14   ;;  %s1787_s13 = sphi %s1879_s13, %s2489_s13  }
  0x16   : > { %2440 = sst [smem:[#allocation26_spill]] %s1799_s16  ;;  %s2408_s20 = sadd.s32 4294967294, %s1807_s18  }
  0x17   : > { %2441 = sst [smem:[#allocation27_spill]] %s1803_s17  ;;  %p65_p0 = scmp.ne.s32.totalorder %s1795_s15, %s1791_s14 }
  0x18   : > { %p66_p1 = scmp.eq.s32.totalorder %s1807_s18, 0  ;;  %p71_p2 = scmp.ne.s32.totalorder %s1791_s14, %s1787_s13 }
  0x19   : > { %p2413_p3 = scmp.eq.s32.totalorder %s1910_s19, 0  ;;  %p265_p4 = scmp.eq.s32.totalorder %s1910_s19, 1 }
  0x1a   : > { %p1921_p5 = por %p66_p1, %p65_p0  ;;  %p271_p6 = scmp.eq.s32.totalorder %s2408_s20, 1 }
  0x1b   : > { %p1929_p7 = por %p2413_p3, %p71_p2  ;;  %p1933_p8 = por %p265_p4, %p65_p0 }
  0x1c   : > { %p1937_p9 = por %p271_p6, %p71_p2  ;;  %p1224_p10 = scmp.ge.s32.totalorder %s1807_s18, 1 }
  0x1d   : > { %s2443_s23 = scalar_select %p1929_p7, 1, 0 }
  0x1e   : > { %s2444_s24 = scalar_select %p1933_p8, 1, 0 }
  0x1f   : > { %s2446_s25 = scalar_select %p1937_p9, 1, 0 }
  0x20   : > { %2445 = sst [smem:[#allocation28_spill]] %s2444_s24  ;;  %p334_p11 = scmp.lt.s32.totalorder %s1807_s18, 3 }
  0x21   : > { %2447 = sst [smem:[#allocation29_spill]] %s2446_s25  ;;  %s1809_s27 = smov [#allocation10]  }
  0x22   : > { %p1943_p12 = pnand %p1224_p10, %p334_p11  ;;  %s346_s28 = sshll.u32 %s1809_s27, 4  ;;  %s1947_s28 = int_to_ptr.vmem [resolvable:$true] %s346_s28 }
  0x23   : > { %s1810_s30 = smov [#allocation11]   ;;  %s2450_s4 = sld [smem:[#allocation33_spill]] }
  0x24   : > { %s2448_s26 = scalar_select %p1943_p12, 1, 0 }
  0x25   : > { %p1318_p13 = pneg %p1943_p12  ;;  %s362_s11 = sshll.u32 %s1810_s30, 4  ;;  %s1958_s11 = int_to_ptr.vmem [resolvable:$true] %s362_s11 }
  0x27   : > { %p1954_p1 = pnand %p1318_p13, %p2413_p3 }
  0x29   : > { %s2449_s29 = scalar_select %p1954_p1, 1, 0 }
  0x2a   : > { %s1445_s27 = scalar_lea.hbm %s2450_s4, 256  ;;  %p1969_p4 = pneg %p1954_p1 }
  0x2b   : > { %p1446_p2 = scmp.ne.s32.totalorder %s2450_s4, %s1445_s27  ;;  %p1452_p11 = scmp.lt.u32.totalorder %s1445_s27, %s2450_s4 }
  0x2c   : > { %s2451_s10 = scalar_select %p1969_p4, 1, 0 }
  0x2d   : > { %p1448_p6 = pnand %p1969_p4, %p1446_p2 }
  0x2f   : > { %p1449_p10 = pneg %p1448_p6 }
  0x31   : > { %p1454_p13 = pnand %p1452_p11, %p1449_p10 }
  0x33   : > { %1457 = shalt.err (!%p1454_p13)
}
  0x34   : > { %s1458_s13 = scalar_lea.vmem %s1947_s28, 256  ;;  %p1466_p8 = scmp.lt.s32.totalorder %s1947_s28, %s1947_s28 }
  0x35   : > { %p1459_p0 = scmp.ne.s32.totalorder %s1947_s28, %s1458_s13  ;;  %p1467_p7 = scmp.lt.s32.totalorder %s1458_s13, %s1458_s13 }
  0x37   : > { %p1461_p3 = pnand %p1459_p0, %p1969_p4  ;;  %p1468_p2 = por %p1467_p7, %p1466_p8 }
  0x39   : > { %p1462_p9 = pneg %p1461_p3 }
  0x3b   : > { %p1469_p6 = pnand %p1468_p2, %p1462_p9 }
  0x3d   : > { %1472 = shalt.err (!%p1469_p6)
}
  0x3e   : > { %s2419_s20 = smov 128   ;;  %s2421_s8 = smov 8  }
  0x3f   : > { %1321 = dma.hbm_to_vmem [thread:$0]  (!%p1954_p1), %s2450_s4, 256, %s1947_s28, [#allocation9], %s2419_s20, %s2419_s20, %s2421_s8  }
  0x40   : > { %s2452_s6 = sld [smem:[#allocation35_spill]] }
  0x46   : > { %s1473_s13 = scalar_lea.hbm %s2452_s6, 512 }
  0x47   : > { %p1474_p3 = scmp.ne.s32.totalorder %s2452_s6, %s1473_s13  ;;  %p1480_p9 = scmp.lt.u32.totalorder %s1473_s13, %s2452_s6 }
  0x49   : > { %p1476_p7 = pnand %p1474_p3, %p1969_p4 }
  0x4b   : > { %p1477_p8 = pneg %p1476_p7 }
  0x4d   : > { %p1482_p0 = pnand %p1480_p9, %p1477_p8 }
  0x4f   : > { %1485 = shalt.err (!%p1482_p0)
}
  0x50   : > { %s1486_s28 = scalar_lea.vmem %s1958_s11, 512  ;;  %p1494_p2 = scmp.lt.s32.totalorder %s1958_s11, %s1958_s11 }
  0x51   : > { %p1487_p10 = scmp.ne.s32.totalorder %s1958_s11, %s1486_s28  ;;  %p1495_p6 = scmp.lt.s32.totalorder %s1486_s28, %s1486_s28 }
  0x53   : > { %p1489_p11 = pnand %p1487_p10, %p1969_p4  ;;  %p1496_p3 = por %p1495_p6, %p1494_p2 }
  0x55   : > { %p1490_p13 = pneg %p1489_p11 }
  0x57   : > { %p1497_p7 = pnand %p1496_p3, %p1490_p13 }
  0x59   : > { %1500 = shalt.err (!%p1497_p7)
}
  0x5a   : > { %1324 = dma.hbm_to_vmem [thread:$0]  (!%p1954_p1), %s2452_s6, 512, %s1958_s11, [#allocation12], %s2419_s20, %s2419_s20, %s2421_s8  }
  0x5b   : > { %s2453_s24 = sadd.s32 1, %s1803_s17  ;;  %p1354_p9 = scmp.lt.s32.totalorder %s1807_s18, 2 }
  0x5c   : > { %p51_p8 = scmp.ge.s32.totalorder %s2453_s24, 2  ;;  %s2420_s12 = sand.u32 1, %s1795_s15  }
  0x5d   : > { %s2024_s21 = sshll.u32 %s1803_s17, 7  ;;  %s2454_s25 = smov %s2453_s24 }
  0x5e   : > { %s2493_s25 = smov (%p51_p8, %s2454_s25), 0  ;;  %s2032_s27 = sshll.u32 %s2420_s12, 3 }
  0x5f   : > { %2455 = sst [smem:[#allocation30_spill]] %s2493_s25  ;;  %p2036_p0 = pnand %p1354_p9, %p1921_p5 }
  0x60   : > { %s53_s11 = ssub.s32 %s1803_s17, %s2493_s25  ;;  %s2422_s13 = sand.u32 1, %s1807_s18  }
  0x61   : > { %s2456_s30 = scalar_select %p2036_p0, 1, 0 }
  0x62   : > { %p56_p10 = scmp.eq.s32.totalorder %s53_s11, 0  ;;  %s2457_s28 = sadd.s32 1, %s1795_s15 }
  0x63   : > { %s2459_s1 = sld [smem:[#allocation32_spill]]  ;;  %s416_s22 = scalar_lea.vmem [#allocation5], %s2032_s27 }
  0x64   : > { %s2046_s9 = scalar_select %p56_p10, %s1795_s15, %s2457_s28  }
  0x65   : > { %s425_s12 = sshll.u32 %s416_s22, 4  ;;  %s2059_s8 = scalar_lea.sflag [#allocation6], %s2422_s13  ;;  %s2055_s12 = int_to_ptr.vmem [resolvable:$true] %s425_s12 }
  0x66   : > { %2458 = sst [smem:[#allocation31_spill]] %s2046_s9  ;;  %p2065_p11 = pneg %p2036_p0 }
  0x69   : > { %s2052_s20 = scalar_lea.hbm %s2459_s1, %s2024_s21  ;;  %s1506_s22 = scalar_lea.hbm %s2459_s1, 256 }
  0x6a   : > { %s1501_s11 = scalar_lea.hbm %s2052_s20, 128  ;;  %p1507_p6 = scmp.lt.u32.totalorder %s2052_s20, %s2459_s1 }
  0x6b   : > { %p1502_p5 = scmp.ne.s32.totalorder %s2052_s20, %s1501_s11  ;;  %p1508_p3 = scmp.lt.u32.totalorder %s1506_s22, %s1501_s11 }
  0x6c   : > { %p1510_p8 = scmp.lt.u32.totalorder %s1501_s11, %s2052_s20 }
  0x6d   : > { %p1504_p13 = pnand %p2065_p11, %p1502_p5  ;;  %p1509_p7 = por %p1508_p3, %p1507_p6 }
  0x6f   : > { %p1505_p2 = pneg %p1504_p13  ;;  %p1511_p9 = por %p1510_p8, %p1509_p7 }
  0x71   : > { %p1512_p10 = pnand %p1511_p9, %p1505_p2 }
  0x73   : > { %1515 = shalt.err (!%p1512_p10)
}
  0x74   : > { %s1516_s13 = scalar_lea.vmem %s2055_s12, 128  ;;  %s1813_s16 = smov [#allocation5]  }
  0x75   : > { %p1517_p5 = scmp.ne.s32.totalorder %s2055_s12, %s1516_s13  ;;  %s1521_s24 = sshll.u32 %s1813_s16, 4  ;;  %s1522_s24 = int_to_ptr.vmem [resolvable:$false] %s1521_s24 }
  0x76   : > { %s1523_s4 = scalar_lea.vmem %s1522_s24, 256  ;;  %p1524_p1 = scmp.lt.s32.totalorder %s2055_s12, %s1522_s24 }
  0x77   : > { %p1519_p13 = pnand %p1517_p5, %p2065_p11  ;;  %p1525_p4 = scmp.lt.s32.totalorder %s1523_s4, %s1516_s13 }
  0x79   : > { %p1520_p12 = pneg %p1519_p13  ;;  %p1526_p6 = por %p1525_p4, %p1524_p1 }
  0x7b   : > { %p1527_p3 = pnand %p1526_p6, %p1520_p12 }
  0x7d   : > { %1530 = shalt.err (!%p1527_p3)
}
  0x7e   : > { %s1814_s6 = smov 64   ;;  %s1815_s11 = smov 4  }
  0x7f   : > { %1334 = dma.hbm_to_vmem [thread:$0]  (!%p2036_p0), %s2052_s20, 128, %s2055_s12, %s2059_s8, %s1814_s6, %s1814_s6, %s1815_s11  }
  0x80   : > { %s1816_s22 = smov [#allocation13]   ;;  %s2096_s4 = scalar_lea.hbm %s2397_s0, %s2024_s21 }
  0x81   : > { %s375_s16 = sshll.u32 %s1816_s22, 4  ;;  %s1531_s17 = scalar_lea.hbm %s2404_s7, 512  ;;  %s376_s16 = int_to_ptr.vmem [resolvable:$true] %s375_s16 }
  0x82   : > { %p1532_p12 = scmp.ne.s32.totalorder %s2404_s7, %s1531_s17  ;;  %p2461_p1 = scmp.ne.s32.totalorder %s2451_s10, 0 }
  0x83   : > { %p1538_p7 = scmp.lt.u32.totalorder %s1531_s17, %s2404_s7 }
  0x84   : > { %p1534_p4 = pnand %p1532_p12, %p2461_p1 }
  0x86   : > { %p1535_p2 = pneg %p1534_p4 }
  0x88   : > { %p1540_p8 = pnand %p1538_p7, %p1535_p2 }
  0x8a   : > { %1543 = shalt.err (!%p1540_p8)
}
  0x8b   : > { %s1544_s22 = scalar_lea.vmem %s376_s16, 512  ;;  %p1552_p13 = scmp.lt.s32.totalorder %s376_s16, %s376_s16 }
  0x8c   : > { %p1545_p9 = scmp.ne.s32.totalorder %s376_s16, %s1544_s22  ;;  %p1553_p6 = scmp.lt.s32.totalorder %s1544_s22, %s1544_s22 }
  0x8e   : > { %p1547_p10 = pnand %p1545_p9, %p2461_p1  ;;  %p1554_p3 = por %p1553_p6, %p1552_p13 }
  0x90   : > { %p1548_p5 = pneg %p1547_p10 }
  0x92   : > { %p1555_p0 = pnand %p1554_p3, %p1548_p5 }
  0x94   : > { %1558 = shalt.err (!%p1555_p0)
}
  0x95   : > { %p2462_p12 = scmp.ne.s32.totalorder %s2449_s29, 0  ;;  %s2463_s1 = smov 8  }
  0x96   : > { %s2464_s5 = smov 128   ;;  %s393_s10 = scalar_lea.vmem [#allocation2], %s2032_s27 }
  0x97   : > { %1327 = dma.hbm_to_vmem [thread:$0]  (!%p2462_p12), %s2404_s7, 512, %s376_s16, [#allocation12], %s2464_s5, %s2464_s5, %s2463_s1  }
  0x98   : > { %s402_s9 = sshll.u32 %s393_s10, 4  ;;  %s2126_s24 = scalar_lea.hbm %s2399_s2, %s2024_s21  ;;  %s2120_s9 = int_to_ptr.vmem [resolvable:$true] %s402_s9 }
  0x99   : > { %s2465_s20 = sand.u32 1, %s1795_s15   ;;  %s1559_s22 = scalar_lea.hbm %s2096_s4, 128 }
  0x9a   : > { %s2130_s12 = scalar_lea.sflag [#allocation3], %s2465_s20  ;;  %p1560_p0 = scmp.ne.s32.totalorder %s2096_s4, %s1559_s22 }
  0x9b   : > { %s1564_s16 = scalar_lea.hbm %s2397_s0, 256  ;;  %p1565_p2 = scmp.lt.u32.totalorder %s2096_s4, %s2397_s0 }
  0x9c   : > { %p1562_p1 = pnand %p1560_p0, %p2065_p11  ;;  %p1566_p7 = scmp.lt.u32.totalorder %s1564_s16, %s1559_s22 }
  0x9d   : > { %p1568_p9 = scmp.lt.u32.totalorder %s1559_s22, %s2096_s4 }
  0x9e   : > { %p1563_p4 = pneg %p1562_p1  ;;  %p1567_p8 = por %p1566_p7, %p1565_p2 }
  0xa0   : > { %p1569_p10 = por %p1568_p9, %p1567_p8 }
  0xa2   : > { %p1570_p5 = pnand %p1569_p10, %p1563_p4 }
  0xa4   : > { %1573 = shalt.err (!%p1570_p5)
}
  0xa5   : > { %s1574_s10 = scalar_lea.vmem %s2120_s9, 128  ;;  %s1817_s29 = smov [#allocation2]  }
  0xa6   : > { %p1575_p13 = scmp.ne.s32.totalorder %s2120_s9, %s1574_s10  ;;  %s1579_s13 = sshll.u32 %s1817_s29, 4  ;;  %s1580_s13 = int_to_ptr.vmem [resolvable:$false] %s1579_s13 }
  0xa7   : > { %s1581_s20 = scalar_lea.vmem %s1580_s13, 256  ;;  %p1582_p12 = scmp.lt.s32.totalorder %s2120_s9, %s1580_s13 }
  0xa8   : > { %p1577_p6 = pnand %p1575_p13, %p2065_p11  ;;  %p1583_p0 = scmp.lt.s32.totalorder %s1581_s20, %s1574_s10 }
  0xaa   : > { %p1578_p3 = pneg %p1577_p6  ;;  %p1584_p1 = por %p1583_p0, %p1582_p12 }
  0xac   : > { %p1585_p2 = pnand %p1584_p1, %p1578_p3 }
  0xae   : > { %1588 = shalt.err (!%p1585_p2)
}
  0xaf   : > { %p2466_p4 = scmp.ne.s32.totalorder %s2456_s30, 0  ;;  %s439_s22 = scalar_lea.vmem [#allocation7], %s2032_s27 }
  0xb0   : > { %s448_s25 = sshll.u32 %s439_s22, 4  ;;  %s2164_s1 = scalar_lea.hbm %s2400_s3, %s2024_s21  ;;  %s2158_s25 = int_to_ptr.vmem [resolvable:$true] %s448_s25 }
  0xb1   : > { %1331 = dma.hbm_to_vmem [thread:$0]  (!%p2466_p4), %s2096_s4, 128, %s2120_s9, %s2130_s12, %s1814_s6, %s1814_s6, %s1815_s11  }
  0xb2   : > { %s1589_s5 = scalar_lea.hbm %s2126_s24, 128  ;;  %s1594_s13 = scalar_lea.hbm %s2399_s2, 256 }
  0xb3   : > { %p1590_p7 = scmp.ne.s32.totalorder %s2126_s24, %s1589_s5  ;;  %p1595_p10 = scmp.lt.u32.totalorder %s2126_s24, %s2399_s2 }
  0xb4   : > { %p1596_p5 = scmp.lt.u32.totalorder %s1594_s13, %s1589_s5  ;;  %p1598_p6 = scmp.lt.u32.totalorder %s1589_s5, %s2126_s24 }
  0xb5   : > { %p1592_p8 = pnand %p1590_p7, %p2065_p11 }
  0xb6   : > { %p1597_p13 = por %p1596_p5, %p1595_p10 }
  0xb7   : > { %p1593_p9 = pneg %p1592_p8 }
  0xb8   : > { %p1599_p3 = por %p1598_p6, %p1597_p13 }
  0xba   : > { %p1600_p12 = pnand %p1599_p3, %p1593_p9 }
  0xbc   : > { %1603 = shalt.err (!%p1600_p12)
}
  0xbd   : > { %s1604_s21 = scalar_lea.vmem %s2158_s25, 128  ;;  %s1818_s9 = smov [#allocation7]  }
  0xbe   : > { %p1605_p0 = scmp.ne.s32.totalorder %s2158_s25, %s1604_s21  ;;  %s1609_s12 = sshll.u32 %s1818_s9, 4  ;;  %s1610_s12 = int_to_ptr.vmem [resolvable:$false] %s1609_s12 }
  0xbf   : > { %s1611_s22 = scalar_lea.vmem %s1610_s12, 256  ;;  %p1612_p7 = scmp.lt.s32.totalorder %s2158_s25, %s1610_s12 }
  0xc0   : > { %p1607_p1 = pnand %p1605_p0, %p2065_p11  ;;  %p1613_p8 = scmp.lt.s32.totalorder %s1611_s22, %s1604_s21 }
  0xc2   : > { %p1608_p2 = pneg %p1607_p1  ;;  %p1614_p10 = por %p1613_p8, %p1612_p7 }
  0xc4   : > { %p1615_p5 = pnand %p1614_p10, %p1608_p2 }
  0xc6   : > { %1618 = shalt.err (!%p1615_p5)
}
  0xc7   : > { %1337 = dma.hbm_to_vmem [thread:$0]  (!%p2466_p4), %s2126_s24, 128, %s2158_s25, %s2059_s8, %s1814_s6, %s1814_s6, %s1815_s11  }
  0xc8   : > { %s462_s17 = scalar_lea.vmem [#allocation8], %s2032_s27  ;;  %s2467_s5 = sand.u32 1, %s1807_s18  }
  0xc9   : > { %s471_s16 = sshll.u32 %s462_s17, 4  ;;  %s2196_s10 = scalar_lea.sflag [#allocation9], %s2467_s5  ;;  %s2192_s16 = int_to_ptr.vmem [resolvable:$true] %s471_s16 }
  0xca   : > { %s1619_s29 = scalar_lea.hbm %s2164_s1, 128  ;;  %s1624_s4 = scalar_lea.hbm %s2400_s3, 256 }
  0xcb   : > { %p1620_p9 = scmp.ne.s32.totalorder %s2164_s1, %s1619_s29  ;;  %p1625_p3 = scmp.lt.u32.totalorder %s2164_s1, %s2400_s3 }
  0xcc   : > { %p1626_p12 = scmp.lt.u32.totalorder %s1624_s4, %s1619_s29  ;;  %p1628_p1 = scmp.lt.u32.totalorder %s1619_s29, %s2164_s1 }
  0xcd   : > { %p1622_p13 = pnand %p1620_p9, %p2065_p11 }
  0xce   : > { %p1627_p0 = por %p1626_p12, %p1625_p3 }
  0xcf   : > { %p1623_p6 = pneg %p1622_p13 }
  0xd0   : > { %p1629_p2 = por %p1628_p1, %p1627_p0 }
  0xd2   : > { %p1630_p7 = pnand %p1629_p2, %p1623_p6 }
  0xd4   : > { %1633 = shalt.err (!%p1630_p7)
}
  0xd5   : > { %s1634_s8 = scalar_lea.vmem %s2192_s16, 128  ;;  %s1819_s27 = smov [#allocation8]  }
  0xd6   : > { %p1635_p8 = scmp.ne.s32.totalorder %s2192_s16, %s1634_s8  ;;  %s1639_s24 = sshll.u32 %s1819_s27, 4  ;;  %s1640_s24 = int_to_ptr.vmem [resolvable:$false] %s1639_s24 }
  0xd7   : > { %s1641_s25 = scalar_lea.vmem %s1640_s24, 256  ;;  %p1642_p9 = scmp.lt.s32.totalorder %s2192_s16, %s1640_s24 }
  0xd8   : > { %p1637_p10 = pnand %p1635_p8, %p2065_p11  ;;  %p1643_p13 = scmp.lt.s32.totalorder %s1641_s25, %s1634_s8 }
  0xda   : > { %p1638_p5 = pneg %p1637_p10  ;;  %p1644_p3 = por %p1643_p13, %p1642_p9 }
  0xdc   : > { %p1645_p12 = pnand %p1644_p3, %p1638_p5 }
  0xde   : > { %1648 = shalt.err (!%p1645_p12)
}
  0xdf   : > { %1340 = dma.hbm_to_vmem [thread:$0]  (!%p2466_p4), %s2164_s1, 128, %s2192_s16, %s2196_s10, %s1814_s6, %s1814_s6, %s1815_s11  }
  0xe0   : > { %p2468_p11 = scmp.ne.s32.totalorder %s2448_s26, 0 }
  0xe1   : > { %s2226_s28 = sand.u32 (!%p2468_p11), 1, %s1791_s14   ;;  %p2469_p6 = scmp.ne.s32.totalorder (!%p2468_p11), %s2443_s23, 0 }
  0xe2   : > { %483 = sbr.rel (%p2468_p11) target bundleno = 556 (0x22c), region = 52  ;;  %s2229_s12 = sshll.u32 (!%p2468_p11), %s2226_s28, 3 }
  0xe3   : > { %s486_s30 = scalar_lea.sflag (!%p2468_p11), [#allocation3], %s2226_s28  ;;  %s489_s22 = scalar_lea.vmem (!%p2468_p11), [#allocation2], %s2229_s12 }
  0xe9   : > { %1758 = dma.done.wait (%p2469_p6), %s486_s30, 128  }
  0xea   : > { %1760 = vsyncadd (%p2469_p6), %s486_s30, 4294967168  ;;  %s2238_s26 = sand.u32 1, %s1910_s19   ;;  %s498_s11 = scalar_lea.vmem [#allocation5], %s2229_s12 }
  0xeb   : > { %s495_s6 = scalar_lea.sflag [#allocation6], %s2238_s26 }
  0xec   : > { %1762 = dma.done.wait (%p2469_p6), %s495_s6, 256  }
  0xed   : > { %1764 = vsyncadd (%p2469_p6), %s495_s6, 4294967040  ;;  %s507_s1 = scalar_lea.vmem [#allocation7], %s2229_s12  ;;  %s513_s17 = scalar_lea.sflag [#allocation9], %s2238_s26 }
  0xee   : > { %s516_s16 = scalar_lea.vmem [#allocation8], %s2229_s12 }
  0xef   : > { %1766 = dma.done.wait (%p2469_p6), %s513_s17, 128  }
  0xf0   : > { %1768 = vsyncadd (%p2469_p6), %s513_s17, 4294967168  ;;  %p2470_p4 = scmp.eq.s32.totalorder %s1910_s19, 0 }
  0xf2   : > { %1770 = dma.done.wait (%p2470_p4), [#allocation9], 256   ;;  %p2471_p0 = pmov %p2470_p4 }
  0xf4   : > { %1772 = vsyncadd (%p2471_p0), [#allocation9], 4294967040  ;;  %p2472_p1 = pmov %p2471_p0 }
  0xf5   : > { %p2473_p2 = pmov %p2471_p0 }
  0xf6   : > { %1774 = dma.done.wait (%p2472_p1), [#allocation12], 1024  }
  0xf7   : > { %1776 = vsyncadd (%p2473_p2), [#allocation12], 4294966272  ;;  %v1820_v0 = vmov 0   ;;  %s2474_s29 = sld [smem:[#allocation34_spill]]  ;;  %v1417_v2 = vld [vmem:[#allocation13 + $0x4] ss:$8 sps:$4 sm:$0xff]  }
  0xf8   : > { %654 = vmatprep.mubr.bf16.mxu0 %v1820_v0  ;;  %799 = vmatprep.mubr.bf16.mxu1 %v1820_v0  ;;  %v1420_v4 = vld [vmem:[#allocation13] ss:$8 sps:$4 sm:$0xff]   ;;  %vm618_vm0 = vcmask 130048   ;;  %v1422_v6 = vld [vmem:[#allocation13 + $0x14] ss:$8 sps:$4 sm:$0xff]   ;;  %vm763_vm1 = vcmask 261120  }
  0xf9   : > { %767 = vmatprep.subr.bf16.mxu1 %v1417_v2  ;;  %v1421_v5 = vld [vmem:[%s498_s11] sm:$0xff]   ;;  %v1424_v7 = vld [vmem:[#allocation13 + $0x10] ss:$8 sps:$4 sm:$0xff]   ;;  %v1427_v9 = vld [vmem:[#allocation10 + $0x4] ss:$8 sps:$4 sm:$0xff]   ;;  %s2475_s19 = sld [smem:[#allocation26_spill]] }
  0xfa   : > { %768 = vmatpush1.bf16.msra.mxu1 %v1420_v4  ;;  %v1425_v8 = vld [vmem:[#allocation10] ss:$8 sps:$4 sm:$0xff]   ;;  %v1428_v10 = vld [vmem:[%s516_s16] sm:$0xff]   ;;  %v1434_v13 = vld [vmem:[#allocation11 + $0x14] ss:$8 sps:$4 sm:$0xff]   ;;  %s582_s4 = scalar_lea.vmem [#allocation15], %s2229_s12 }
  0xfb   : > { %769 = vmatprep.subr.bf16.mxu1 %v1422_v6  ;;  %v1429_v11 = vld [vmem:[#allocation11] ss:$8 sps:$4 sm:$0xff]   ;;  %v1431_v12 = vld [vmem:[#allocation11 + $0x4] ss:$8 sps:$4 sm:$0xff]   ;;  %v1432_v14 = vld [vmem:[#allocation11 + $0x10] ss:$8 sps:$4 sm:$0xff]  }
  0xfc   : > { %v1435_v15 = vld [vmem:[%s489_s22] sm:$0xff]   ;;  %s960_s21 = sshll.u32 %s582_s4, 4  ;;  %s2476_s9 = sld [smem:[#allocation28_spill]]  ;;  %s2288_s21 = int_to_ptr.vmem [resolvable:$true] %s960_s21 }
  0xfd   : > { %v1415_v1 = vld [vmem:[%s2474_s29 + $0x4] ss:$8 sps:$4 sm:$0xff]   ;;  %v1419_v3 = vld [vmem:[%s2474_s29] ss:$8 sps:$4 sm:$0xff]   ;;  %s575_s8 = scalar_lea.vmem [#allocation14], %s2229_s12  ;;  %s2477_s30 = sld [smem:[#allocation37_spill]] }
  0xfe   : > { %622 = vmatprep.subr.bf16.mxu0 %v1415_v1  ;;  %770 = vmatpush1.bf16.msra.mxu1 %v1424_v7  ;;  %v1436_v16 = vld [vmem:[%s507_s1] sm:$0xff]   ;;  %s946_s27 = sshll.u32 %s575_s8, 4  ;;  %s2478_s1 = sld [smem:[#allocation36_spill]]  ;;  %s2296_s27 = int_to_ptr.vmem [resolvable:$true] %s946_s27 }
  0xff   : > { %623 = vmatpush1.bf16.msra.mxu0 %v1419_v3  ;;  %838 = vmatprep.subr.bf16.mxu1 %v1431_v12  ;;  %s2276_s20 = sshll.u32 %s2475_s19, 7  ;;  %s927_s16 = scalar_lea.sflag [#allocation16], %s2238_s26 }
 0x100   : > { %683 = vmatprep.subr.bf16.mxu0 %v1427_v9  ;;  %s1649_s5 = scalar_lea.vmem %s2288_s21, 128  ;;  %s1821_s10 = smov [#allocation15]  }
 0x101   : > { %1265 = vmatmul.mubr.msk.bf16.vlgmr.msra.gmra.mrb[0].mxu1 %vm763_vm1, %v1428_v10  ;;  %p1650_p7 = scmp.ne.s32.totalorder %s2288_s21, %s1649_s5  ;;  %s1653_s23 = sshll.u32 %s1821_s10, 4  ;;  %s1654_s23 = int_to_ptr.vmem [resolvable:$false] %s1653_s23 }
 0x102   : > { %1255 = vmatmul.mubr.msk.bf16.vlgmr.msra.gmra.mrb[0].mxu0 %vm618_vm0, %v1421_v5  ;;  %839 = vmatpush1.bf16.msra.mxu1 %v1429_v11  ;;  %p2479_p8 = scmp.ne.s32.totalorder %s2476_s9, 0  ;;  %s1655_s13 = scalar_lea.vmem %s1654_s23, 256 }
 0x103   : > { %684 = vmatpush1.bf16.msra.mxu0 %v1425_v8  ;;  %715 = vmatprep.mubr.bf16.mxu0 %v1820_v0  ;;  %s2286_s22 = scalar_lea.hbm %s2477_s30, %s2276_s20  ;;  %p1656_p9 = scmp.lt.s32.totalorder %s2288_s21, %s1654_s23 }
 0x104   : > { %870 = vmatprep.mubr.bf16.mxu1 %v1820_v0  ;;  %840 = vmatprep.subr.bf16.mxu1 %v1434_v13  ;;  %s2294_s17 = scalar_lea.hbm %s2478_s1, %s2276_s20  ;;  %p1651_p10 = pnand %p1650_p7, %p2479_p8 }
 0x105   : > { %p1657_p13 = scmp.lt.s32.totalorder %s1655_s13, %s1649_s5 }
 0x106   : > { %841 = vmatpush1.bf16.msra.mxu1 %v1432_v14  ;;  %p1652_p5 = pneg %p1651_p10 }
 0x107   : > { %p1658_p3 = por %p1657_p13, %p1656_p9 }
 0x109   : > { %p1659_p12 = pnand %p1658_p3, %p1652_p5 }
 0x10d   : > { %1271 = vmatmul.mubr.msk.bf16.vlgmr.msra.gmra.mrb[0].mxu1 %vm763_vm1, %v1436_v16 }
 0x10e   : > { %1259 = vmatmul.mubr.msk.bf16.vlgmr.msra.gmra.mrb[0].mxu0 %vm618_vm0, %v1435_v15 }
 0x1e0   : > { %v872_v26 = vpop.f32.mrb[0].mxu1 }
 0x1e1   : > { %v717_v17 = vpop.f32.mrb[0].mxu0  ;;  %v889_v27 = vmul.f32 %v872_v26, %v872_v26  ;;  %v874_v28 = vpop.f32.mrb[1].mxu1 }
 0x1e2   : > { %v881_v18 = vmul.f32 %v717_v17, %v717_v17  ;;  %v719_v19 = vpop.f32.mrb[1].mxu0  ;;  %v891_v31 = vmul.f32 %v874_v28, %v874_v28  ;;  %v876_v32 = vpop.f32.mrb[2].mxu1 }
 0x1e3   : > { %v883_v20 = vmul.f32 %v719_v19, %v719_v19  ;;  %v721_v21 = vpop.f32.mrb[2].mxu0  ;;  %v890_v33 = vmul.f32 %v876_v32, %v876_v32  ;;  %v878_v34 = vpop.f32.mrb[3].mxu1 }
 0x1e4   : > { %v882_v22 = vmul.f32 %v721_v21, %v721_v21  ;;  %v723_v23 = vpop.f32.mrb[3].mxu0  ;;  %v893_v36 = vadd.f32 %v891_v31, %v889_v27  ;;  %v892_v37 = vmul.f32 %v878_v34, %v878_v34 }
 0x1e5   : > { %v885_v24 = vadd.f32 %v883_v20, %v881_v18  ;;  %v884_v25 = vmul.f32 %v723_v23, %v723_v23 }
 0x1e6   : > { %v895_v38 = vmax.f32 %v893_v36, 1e-07  ;;  %v894_v39 = vadd.f32 %v892_v37, %v890_v33 }
 0x1e7   : > { %v887_v29 = vmax.f32 %v885_v24, 1e-07  ;;  %v886_v30 = vadd.f32 %v884_v25, %v882_v22 }
 0x1e8   : > { %v896_v41 = vmax.f32 %v894_v39, 1e-07  ;;  %v915_v42 = vmul.f32 %v895_v38, %v895_v38 }
 0x1e9   : > { %v888_v35 = vmax.f32 %v886_v30, 1e-07  ;;  %1437 = vlog2.f32 %v887_v29  ;;  %v897_v40 = vsub.f32 %v895_v38, %v887_v29 }
 0x1ea   : > { %v916_v44 = vmul.f32 %v896_v41, %v896_v41 }
 0x1eb   : > { %1439 = vlog2.f32 %v888_v35  ;;  %v898_v43 = vsub.f32 %v896_v41, %v888_v35  ;;  %v911_v45 = vmul.f32 %v897_v40, %v897_v40 }
 0x1ec   : > { %1441 = vlog2.f32 %v895_v38  ;;  %v917_v47 = vadd.f32 %v916_v44, %v915_v42 }
 0x1ed   : > { %1443 = vlog2.f32 %v896_v41  ;;  %v912_v46 = vmul.f32 %v898_v43, %v898_v43 }
 0x1ee   : > { %918 = vst [vmem:[%s582_s4] sm:$0xff] %v917_v47 }
 0x1ef   : > { %v913_v48 = vadd.f32 %v912_v46, %v911_v45 }
 0x1f0   : > { %1662 = shalt.err (!%p1659_p12)
}
 0x1f1   : > { %s1663_s19 = scalar_lea.hbm %s2286_s22, 128  ;;  %s1667_s25 = scalar_lea.hbm %s2477_s30, 256 }
 0x1f2   : > { %p1664_p11 = scmp.ne.s32.totalorder %s2286_s22, %s1663_s19  ;;  %p1668_p0 = scmp.lt.u32.totalorder %s2286_s22, %s2477_s30 }
 0x1f3   : > { %p1669_p1 = scmp.lt.u32.totalorder %s1667_s25, %s1663_s19  ;;  %p1671_p7 = scmp.lt.u32.totalorder %s1663_s19, %s2286_s22 }
 0x1f4   : > { %p1665_p6 = pnand %p1664_p11, %p2479_p8 }
 0x1f5   : > { %p1670_p2 = por %p1669_p1, %p1668_p0 }
 0x1f6   : > { %p1666_p4 = pneg %p1665_p6 }
 0x1f7   : > { %p1672_p10 = por %p1671_p7, %p1670_p2 }
 0x1f9   : > { %p1673_p5 = pnand %p1672_p10, %p1666_p4 }
 0x1fb   : > { %1676 = shalt.err (!%p1673_p5)
}
 0x1fc   : > { %1313 = dma.vmem_to_hbm [thread:$0]  (%p2479_p8), %s2288_s21, 128, %s2286_s22, %s927_s16   ;;  %v1438_v49 = vpop.eup %1437  ;;  %914 = vst [vmem:[%s575_s8] sm:$0xff] %v913_v48 }
 0x1fd   : > { %v1440_v50 = vpop.eup %1439  ;;  %s922_s5 = scalar_lea.sflag [#allocation4], %s2226_s28  ;;  %s1677_s10 = scalar_lea.vmem %s2296_s27, 128 }
 0x1fe   : > { %p1678_p9 = scmp.ne.s32.totalorder %s2296_s27, %s1677_s10  ;;  %s1822_s23 = smov [#allocation14]  }
 0x1ff   : > { %s1681_s13 = sshll.u32 %s1822_s23, 4  ;;  %s1682_s13 = int_to_ptr.vmem [resolvable:$false] %s1681_s13 }
 0x200   : > { %p1679_p13 = pnand %p1678_p9, %p2479_p8  ;;  %s1683_s19 = scalar_lea.vmem %s1682_s13, 256 }
 0x201   : > { %p1684_p12 = scmp.lt.s32.totalorder %s2296_s27, %s1682_s13  ;;  %p1685_p11 = scmp.lt.s32.totalorder %s1683_s19, %s1677_s10 }
 0x202   : > { %p1680_p3 = pneg %p1679_p13 }
 0x203   : > { %p1686_p6 = por %p1685_p11, %p1684_p12 }
 0x205   : > { %p1687_p4 = pnand %p1686_p6, %p1680_p3 }
 0x207   : > { %1690 = shalt.err (!%p1687_p4)
}
 0x208   : > { %s1691_s28 = scalar_lea.hbm %s2294_s17, 128  ;;  %s1695_s22 = scalar_lea.hbm %s2478_s1, 256 }
 0x209   : > { %p1692_p0 = scmp.ne.s32.totalorder %s2294_s17, %s1691_s28  ;;  %p1696_p7 = scmp.lt.u32.totalorder %s2294_s17, %s2478_s1 }
 0x20a   : > { %p1697_p10 = scmp.lt.u32.totalorder %s1695_s22, %s1691_s28  ;;  %p1699_p9 = scmp.lt.u32.totalorder %s1691_s28, %s2294_s17 }
 0x20b   : > { %p1693_p1 = pnand %p1692_p0, %p2479_p8 }
 0x20c   : > { %p1698_p5 = por %p1697_p10, %p1696_p7 }
 0x20d   : > { %p1694_p2 = pneg %p1693_p1 }
 0x20e   : > { %p1700_p13 = por %p1699_p9, %p1698_p5 }
 0x210   : > { %p1701_p3 = pnand %p1700_p13, %p1694_p2 }
 0x212   : > { %1704 = shalt.err (!%p1701_p3)
}
 0x213   : > { %1312 = dma.vmem_to_hbm [thread:$0]  (%p2479_p8), %s2296_s27, 128, %s2294_s17, %s922_s5   ;;  %v1442_v51 = vpop.eup %1441  ;;  %v904_v52 = vmul.f32 0.6931472, %v1438_v49  ;;  %v906_v55 = vmul.f32 0.6931472, %v1440_v50 }
 0x214   : > { %v900_v53 = vmul.f32 0.6931472, %v1442_v51  ;;  %v1444_v54 = vpop.eup %1443  ;;  %s589_s25 = scalar_lea.vmem [#allocation17], %s2229_s12  ;;  %s2480_s23 = sld [smem:[#allocation38_spill]] }
 0x215   : > { %v902_v57 = vmul.f32 0.6931472, %v1444_v54  ;;  %s974_s6 = sshll.u32 %s589_s25, 4  ;;  %s1823_s17 = smov [#allocation17]   ;;  %s975_s6 = int_to_ptr.vmem [resolvable:$true] %s974_s6 }
 0x216   : > { %v907_v56 = vsub.f32 %v900_v53, %v904_v52  ;;  %s1705_s27 = scalar_lea.vmem %s975_s6, 128  ;;  %s1709_s5 = sshll.u32 %s1823_s17, 4  ;;  %s1710_s5 = int_to_ptr.vmem [resolvable:$false] %s1709_s5 }
 0x217   : > { %v908_v58 = vsub.f32 %v902_v57, %v906_v55  ;;  %p1706_p12 = scmp.ne.s32.totalorder %s975_s6, %s1705_s27  ;;  %s1711_s12 = scalar_lea.vmem %s1710_s5, 256 }
 0x218   : > { %v909_v59 = vand.u32 2147483647, %v907_v56  ;;  %p1712_p4 = scmp.lt.s32.totalorder %s975_s6, %s1710_s5  ;;  %p1713_p0 = scmp.lt.s32.totalorder %s1711_s12, %s1705_s27 }
 0x219   : > { %v910_v60 = vand.u32 2147483647, %v908_v58  ;;  %p1707_p11 = pnand %p1706_p12, %p2479_p8 }
 0x21a   : > { %s2351_s13 = scalar_lea.hbm %s2480_s23, %s2276_s20  ;;  %p1714_p1 = por %p1713_p0, %p1712_p4 }
 0x21b   : > { %v919_v61 = vadd.f32 %v910_v60, %v909_v59  ;;  %p1708_p6 = pneg %p1707_p11 }
 0x21d   : > { %920 = vst [vmem:[%s589_s25] sm:$0xff] %v919_v61  ;;  %p1715_p2 = pnand %p1714_p1, %p1708_p6 }
 0x21f   : > { %1718 = shalt.err (!%p1715_p2)
}
 0x220   : > { %s1719_s20 = scalar_lea.hbm %s2351_s13, 128  ;;  %s1723_s21 = scalar_lea.hbm %s2480_s23, 256 }
 0x221   : > { %p1720_p7 = scmp.ne.s32.totalorder %s2351_s13, %s1719_s20  ;;  %p1724_p9 = scmp.lt.u32.totalorder %s2351_s13, %s2480_s23 }
 0x222   : > { %p1725_p13 = scmp.lt.u32.totalorder %s1723_s21, %s1719_s20  ;;  %p1727_p12 = scmp.lt.u32.totalorder %s1719_s20, %s2351_s13 }
 0x223   : > { %p1721_p10 = pnand %p1720_p7, %p2479_p8 }
 0x224   : > { %p1726_p3 = por %p1725_p13, %p1724_p9 }
 0x225   : > { %p1722_p5 = pneg %p1721_p10 }
 0x226   : > { %p1728_p11 = por %p1727_p12, %p1726_p3 }
 0x228   : > { %p1729_p6 = pnand %p1728_p11, %p1722_p5 }
 0x22a   : > { %1732 = shalt.err (!%p1729_p6)
}
 0x22b   : > { %1314 = dma.vmem_to_hbm [thread:$0]  (%p2479_p8), %s975_s6, 128, %s2351_s13, %s927_s16  }
 0x22c PF: > { %s2481_s4 = sld [smem:[#allocation25_spill]]  ;;  %s2482_s24 = sld [smem:[#allocation29_spill]] }
 0x22d   : > { %p2484_p0 = scmp.ge.s32.totalorder %s1807_s18, 2 }
 0x232   : > { %s986_s25 = sand.u32 1, %s2481_s4   ;;  %p2483_p4 = scmp.ne.s32.totalorder %s2482_s24, 0 }
 0x233   : > { %s987_s11 = scalar_lea.sflag [#allocation4], %s986_s25 }
 0x234   : > { %p1342_p1 = pnand %p2484_p0, %p2483_p4 }
 0x236   : > { %1778 = dma.done.wait (!%p1342_p1), %s987_s11, 128  }
 0x237   : > { %1780 = vsyncadd (!%p1342_p1), %s987_s11, 4294967168  ;;  %s2485_s10 = sadd.s32 4294967294, %s1807_s18  }
 0x238   : > { %s995_s27 = sand.u32 1, %s2485_s10  }
 0x239   : > { %s996_s17 = scalar_lea.sflag [#allocation16], %s995_s27 }
 0x23a   : > { %1782 = dma.done.wait (!%p1342_p1), %s996_s17, 256  }
 0x23b   : > { %1784 = vsyncadd (!%p1342_p1), %s996_s17, 4294967040  ;;  %s37_s18 = sadd.s32 1, %s1807_s18   ;;  %s2486_s26 = sld [smem:[#allocation31_spill]] }
 0x23c   : > { %p34_p8 = scmp.ge.s32.totalorder %s37_s18, 4   ;;  %s2487_s16 = sld [smem:[#allocation27_spill]] }
 0x23d   : > { %s2488_s17 = sld [smem:[#allocation30_spill]]  ;;  %s2489_s13 = smov %s1791_s14 }
 0x23e   : > { %s2490_s14 = smov %s1795_s15  ;;  %36 = sbr.rel (!%p34_p8) target bundleno = 21 (0x15), region = 178 }
 0x241   : > { %s2491_s15 = smov %s2486_s26 }
 0x245   :  { %1010 = vsyncpa [#allocation3], 1 }
 0x246   :  { %1012 = vsyncpa [#allocation3 + $0x1], 1 }
 0x247   :  { %1013 = vsyncpa [#allocation6], 1 }
 0x248   :  { %1015 = vsyncpa [#allocation6 + $0x1], 1 }
 0x249   :  { %1016 = vsyncpa [#allocation9], 1 }
 0x24a   :  { %1018 = vsyncpa [#allocation9 + $0x1], 1 }
 0x24b   :  { %1019 = vsyncpa [#allocation12], 1 }
 0x24c   :  { %1020 = vsyncpa [#allocation4], 1 }
 0x24d   :  { %1022 = vsyncpa [#allocation4 + $0x1], 1 }
 0x24e   :  { %1023 = vsyncpa [#allocation16], 1 }
 0x24f   :  { %1025 = vsyncpa [#allocation16 + $0x1], 1 }

</bundles_post_ra>
